<compile_context>
chip_gen: v5e
topology: v5e:2x2
jax: 0.10.0
libtpu: 0.0.40
codegen_flags: <defaults>
</compile_context>

<pallas_src>
import math
import functools

import jax
import jax.numpy as jnp
from jax import lax
from jax.experimental import pallas as pl
from jax.experimental.pallas import tpu as pltpu

_NEG_INF = -1e30                     # large finite negative (no inf-inf hazards)
_VMEM_LIMIT = 40 * 1024 * 1024       # safe on v5e/v6e (128 MiB) and v7x (64 MiB)


def _pick_block(requested, total):
    """Largest block <= requested that divides total (total is a multiple of 8)."""
    b = min(requested, total)
    b -= b % 8
    b = max(b, 8)
    while total % b != 0:
        b -= 8
    return b


# ----------------------------------------------------------------------------
# Linear (matmul + bias) kernel: rows tiled, weight resident in VMEM.
# ----------------------------------------------------------------------------
def _linear_kernel(x_ref, w_ref, b_ref, o_ref):
    acc = jnp.dot(x_ref[...].astype(jnp.bfloat16), w_ref[...],
                  preferred_element_type=jnp.float32)
    o_ref[...] = (acc + b_ref[...].astype(jnp.float32)).astype(o_ref.dtype)


def _linear(x2d, w_bf16, b_f32, *, out_dtype):
    """x2d: (R, K); w_bf16: (K, N) bfloat16; b_f32: (1, N). Returns (R, N)."""
    R, K = x2d.shape
    Kw, N = w_bf16.shape
    assert K == Kw

    # Pad rows to a multiple of 128 instead of falling back to a whole-array block.
    R_pad = ((R + 127) // 128) * 128
    if R_pad != R:
        x2d = jnp.pad(x2d, ((0, R_pad - R), (0, 0)))
    tm = next(t for t in (512, 256, 128) if R_pad % t == 0)   # big row tile

    out = pl.pallas_call(
        _linear_kernel,
        out_shape=jax.ShapeDtypeStruct((R_pad, N), out_dtype),
        grid_spec=pltpu.PrefetchScalarGridSpec(
            num_scalar_prefetch=0,
            grid=(R_pad // tm,),
            in_specs=[
                pl.BlockSpec((tm, K), lambda i: (i, 0)),
                pl.BlockSpec((K, N), lambda i: (0, 0)),   # constant index -> no re-DMA
                pl.BlockSpec((1, N), lambda i: (0, 0)),
            ],
            out_specs=pl.BlockSpec((tm, N), lambda i: (i, 0)),
        ),
        compiler_params=pltpu.CompilerParams(
            dimension_semantics=("parallel",),
            vmem_limit_bytes=_VMEM_LIMIT),
    )(x2d, w_bf16, b_f32)
    return out[:R] if R_pad != R else out


# ----------------------------------------------------------------------------
# Flash-attention kernel (causal, online softmax, packed heads on the lane dim).
# ----------------------------------------------------------------------------
def _flash_kernel(q_ref, k_ref, v_ref, o_ref, m_sc, l_sc, acc_sc,
                  *, block_q, block_kv, num_packed_heads, head_dim):
    G, hd = num_packed_heads, head_dim
    qi = pl.program_id(2)
    ki = pl.program_id(3)

    @pl.when(ki == 0)
    def _init():
        m_sc[...] = jnp.full_like(m_sc, _NEG_INF)
        l_sc[...] = jnp.zeros_like(l_sc)
        acc_sc[...] = jnp.zeros_like(acc_sc)

    q_start = qi * block_q
    k_start = ki * block_kv

    # Skip kv tiles that are entirely in the future (strictly above the diagonal).
    @pl.when(k_start < q_start + block_q)
    def _compute():
        # Absolute-index causal mask: supports rectangular (block_q != block_kv)
        # tiles; the per-element test is disabled when the tile is fully visible.
        row = q_start + lax.broadcasted_iota(jnp.int32, (block_q, block_kv), 0)
        col = k_start + lax.broadcasted_iota(jnp.int32, (block_q, block_kv), 1)
        fully_visible = (k_start + block_kv - 1) <= q_start
        visible = jnp.logical_or(row >= col, fully_visible)

        # Static unroll over the G heads packed along the 128-wide lane block.
        for g in range(G):
            sl = slice(g * hd, (g + 1) * hd)
            q = q_ref[:, sl]                     # (bq, hd) bf16 (scale pre-folded)
            k = k_ref[:, sl]                     # (bkv, hd) bf16
            v = v_ref[:, sl]                     # (bkv, hd) bf16

            # q @ k^T contracting the head dim (no transpose materialization).
            s = lax.dot_general(q, k, (((1,), (1,)), ((), ())),
                                preferred_element_type=jnp.float32)   # (bq, bkv)
            s = jnp.where(visible, s, _NEG_INF)

            # Online softmax update (f32 statistics).
            m_prev = m_sc[g]
            m_new = jnp.maximum(m_prev, jnp.max(s, axis=-1, keepdims=True))
            alpha = jnp.exp(m_prev - m_new)
            p = jnp.exp(s - m_new)
            l_sc[g] = alpha * l_sc[g] + jnp.sum(p, axis=-1, keepdims=True)
            acc_sc[g] = alpha * acc_sc[g] + jnp.dot(
                p.astype(jnp.bfloat16), v, preferred_element_type=jnp.float32)
            m_sc[g] = m_new

    @pl.when(ki == pl.num_programs(3) - 1)
    def _finalize():
        for g in range(G):
            sl = slice(g * hd, (g + 1) * hd)
            inv_l = pl.reciprocal(l_sc[g], approx=True)
            o_ref[:, sl] = (acc_sc[g] * inv_l).astype(o_ref.dtype)


def _flash_attention(qkv, *, B, T, C, n_head, block_q, block_kv):
    """qkv: (B*T, 3C) bfloat16 (cols = [q | k | v]).  Returns (B*T, C) bfloat16."""
    hd = C // n_head
    # Lane-block width: pack G heads so the last block dim is >= 128 and legal.
    if hd % 128 == 0:
        col_w = hd
    else:
        assert 128 % hd == 0, "head_dim must divide 128 (or be a multiple of 128)"
        col_w = 128
    G = col_w // hd
    n_groups = C // col_w          # head-groups per q/k/v section
    nq = T // block_q
    nk = T // block_kv

    def q_map(b, g, qi, ki):
        return (b * nq + qi, g)

    def k_map(b, g, qi, ki):
        # Clamp pruned (fully masked) kv tiles onto the last needed tile -> no DMA.
        last = ((qi + 1) * block_q - 1) // block_kv
        return (b * nk + jnp.minimum(ki, last), n_groups + g)

    def v_map(b, g, qi, ki):
        last = ((qi + 1) * block_q - 1) // block_kv
        return (b * nk + jnp.minimum(ki, last), 2 * n_groups + g)

    kernel = functools.partial(_flash_kernel, block_q=block_q, block_kv=block_kv,
                               num_packed_heads=G, head_dim=hd)
    return pl.pallas_call(
        kernel,
        out_shape=jax.ShapeDtypeStruct((B * T, C), jnp.bfloat16),
        grid_spec=pltpu.PrefetchScalarGridSpec(
            num_scalar_prefetch=0,
            grid=(B, n_groups, nq, nk),
            in_specs=[
                pl.BlockSpec((block_q, col_w), q_map),
                pl.BlockSpec((block_kv, col_w), k_map),
                pl.BlockSpec((block_kv, col_w), v_map),
            ],
            out_specs=pl.BlockSpec((block_q, col_w), q_map),
            scratch_shapes=[
                pltpu.VMEM((G, block_q, 1), jnp.float32),    # running max m
                pltpu.VMEM((G, block_q, 1), jnp.float32),    # running sum l
                pltpu.VMEM((G, block_q, hd), jnp.float32),   # output accumulator
            ]),
        compiler_params=pltpu.CompilerParams(
            dimension_semantics=("parallel", "parallel", "parallel", "arbitrary"),
            vmem_limit_bytes=_VMEM_LIMIT),
    )(qkv, qkv, qkv)


# ----------------------------------------------------------------------------
# Full module forward.
# ----------------------------------------------------------------------------
def causal_self_attention(x, params, *, n_head, block_q=256, block_kv=512):
    """x: (B, T, C) float32.

    params:
      w_qkv : (C, 3C)  fused [Wq | Wk | Wv] in x@W convention (= torch W.T)
      b_qkv : (1, 3C)  fused [bq | bk | bv]
      wp    : (C, C)
      bp    : (1, C)
    """
    B, T, C = x.shape
    assert C % n_head == 0
    hd = C // n_head
    assert C % 128 == 0, "C must be a multiple of 128 (lane-dense blocks)"
    assert hd % 128 == 0 or 128 % hd == 0, "head_dim must divide or be divisible by 128"
    assert T % 8 == 0, "T must be a multiple of 8 (sublane alignment)"

    block_q = _pick_block(block_q, T)
    block_kv = _pick_block(block_kv, T)

    # Fold 1/sqrt(hd) into the Q columns of the fused QKV weight/bias (in f32,
    # before the bf16 cast) -> no per-step q scaling / extra rounding in-kernel.
    scale = 1.0 / math.sqrt(hd)
    col_scale = jnp.concatenate(
        [jnp.full((1, C), scale, jnp.float32), jnp.ones((1, 2 * C), jnp.float32)],
        axis=1)
    w_qkv = (params["w_qkv"].astype(jnp.float32) * col_scale).astype(jnp.bfloat16)
    b_qkv = (params["b_qkv"].astype(jnp.float32) * col_scale)
    wp = params["wp"].astype(jnp.bfloat16)
    bp = params["bp"].astype(jnp.float32)

    # 1) Fused QKV projection: (B*T, C) @ (C, 3C) + b -> bf16 activations.
    x2d = x.reshape(B * T, C)
    qkv = _linear(x2d, w_qkv, b_qkv, out_dtype=jnp.bfloat16)        # (B*T, 3C)

    # 2) Flash attention core, reading qkv directly (no head split / transposes).
    y2d = _flash_attention(qkv, B=B, T=T, C=C, n_head=n_head,
                           block_q=block_q, block_kv=block_kv)      # (B*T, C)

    # 3) Output projection (lane-dense C-wide output).
    out = _linear(y2d, wp, bp, out_dtype=x.dtype)                   # (B*T, C)
    return out.reshape(B, T, C)


# ----------------------------------------------------------------------------
# Pure-JAX reference mirroring the PyTorch forward (eval mode, f32).
# ----------------------------------------------------------------------------
def reference_attention(x, wq, bq, wk, bk, wv, bv, wp, bp, *, n_head):
    B, T, C = x.shape
    hd = C // n_head
    q = x @ wq + bq
    k = x @ wk + bk
    v = x @ wv + bv
    q = q.reshape(B, T, n_head, hd).transpose(0, 2, 1, 3)
    k = k.reshape(B, T, n_head, hd).transpose(0, 2, 1, 3)
    v = v.reshape(B, T, n_head, hd).transpose(0, 2, 1, 3)
    att = (q @ jnp.swapaxes(k, -2, -1)) * (1.0 / math.sqrt(hd))
    mask = jnp.tril(jnp.ones((T, T), dtype=bool))
    att = jnp.where(mask[None, None], att, -jnp.inf)
    att = jax.nn.softmax(att, axis=-1)
    y = att @ v
    y = y.transpose(0, 2, 1, 3).reshape(B, T, C)
    return y @ wp + bp


if __name__ == "__main__":
    # Small but alignment-friendly config: C multiple of 128, T multiple of 8.
    B, T, C, N_HEAD = 2, 64, 128, 4

    key = jax.random.PRNGKey(0)
    kx, kq, kk, kv, kp, kbq, kbk, kbv, kbp = jax.random.split(key, 9)

    scale = 1.0 / math.sqrt(C)
    wq = jax.random.uniform(kq, (C, C), jnp.float32, -scale, scale)
    wk = jax.random.uniform(kk, (C, C), jnp.float32, -scale, scale)
    wv = jax.random.uniform(kv, (C, C), jnp.float32, -scale, scale)
    wp = jax.random.uniform(kp, (C, C), jnp.float32, -scale, scale)
    bq = jax.random.uniform(kbq, (1, C), jnp.float32, -scale, scale)
    bk = jax.random.uniform(kbk, (1, C), jnp.float32, -scale, scale)
    bv = jax.random.uniform(kbv, (1, C), jnp.float32, -scale, scale)
    bp = jax.random.uniform(kbp, (1, C), jnp.float32, -scale, scale)

    # Fused QKV layout is constructed explicitly (q | k | v) -> no ordering risk.
    params = {
        "w_qkv": jnp.concatenate([wq, wk, wv], axis=1),   # (C, 3C)
        "b_qkv": jnp.concatenate([bq, bk, bv], axis=1),   # (1, 3C)
        "wp": wp,
        "bp": bp,
    }

    x = jax.random.normal(kx, (B, T, C), jnp.float32)

    out = causal_self_attention(x, params, n_head=N_HEAD)
    out = jax.block_until_ready(out)

    ref = reference_attention(x, wq, bq, wk, bk, wv, bv, wp, bp, n_head=N_HEAD)

    assert out.shape == (B, T, C)
    max_err = jnp.max(jnp.abs(out - ref))
    # bf16 MXU operands + approx reciprocal -> relaxed tolerance vs f32 reference.
    assert jnp.allclose(out, ref, atol=3e-2, rtol=3e-2), f"max err {max_err}"

    print("KERNEL_OK")
</pallas_src>

<mosaic_0001>
module attributes {stable_mosaic.version = 11 : i64} {
  func.func @_linear_kernel(%arg0: i32, %arg1: memref<128x128xf32, #tpu.memory_space<vmem>>, %arg2: memref<128x384xbf16, #tpu.memory_space<vmem>>, %arg3: memref<1x384xf32, #tpu.memory_space<vmem>>, %arg4: memref<128x384xbf16, #tpu.memory_space<vmem>>) attributes {dimension_semantics = [#tpu.dimension_semantics<parallel>], iteration_bounds = array<i64: 1>, scalar_prefetch = 0 : i64, scratch_operands = 0 : i64, tpu.core_type = #tpu.core_type<tc>, window_params = [{transform_indices = @transform_0, window_bounds = array<i64: 128, 128>}, {pipeline_mode = #tpu.pipeline_mode<synchronous>, transform_indices = @transform_1, window_bounds = array<i64: 128, 384>}, {pipeline_mode = #tpu.pipeline_mode<synchronous>, transform_indices = @transform_2, window_bounds = array<i64: 1, 384>}, {transform_indices = @transform_3, window_bounds = array<i64: 128, 384>}]} {
    %c0 = arith.constant 0 : index
    %c0_0 = arith.constant 0 : index
    %0 = vector.load %arg1[%c0, %c0_0] : memref<128x128xf32, #tpu.memory_space<vmem>>, vector<128x128xf32>
    %1 = arith.truncf %0 : vector<128x128xf32> to vector<128x128xbf16>
    %c0_1 = arith.constant 0 : index
    %c0_2 = arith.constant 0 : index
    %2 = vector.load %arg2[%c0_1, %c0_2] : memref<128x384xbf16, #tpu.memory_space<vmem>>, vector<128x384xbf16>
    %cst = arith.constant dense<0.000000e+00> : vector<128x384xf32>
    %3 = tpu.matmul %1, %2, %cst {dimension_numbers = #tpu.dot_dimension_numbers<[1], [0], [0], [1], [0, 0, 1, 1], [], []>} : vector<128x128xbf16>, vector<128x384xbf16>, vector<128x384xf32> -> vector<128x384xf32>
    %c0_3 = arith.constant 0 : index
    %c0_4 = arith.constant 0 : index
    %4 = vector.load %arg3[%c0_3, %c0_4] : memref<1x384xf32, #tpu.memory_space<vmem>>, vector<1x384xf32>
    %5 = vector.broadcast %4 : vector<1x384xf32> to vector<128x384xf32>
    %6 = arith.addf %3, %5 : vector<128x384xf32>
    %7 = arith.truncf %6 : vector<128x384xf32> to vector<128x384xbf16>
    %c0_5 = arith.constant 0 : index
    %c0_6 = arith.constant 0 : index
    %8 = vector.load %arg4[%c0_5, %c0_6] : memref<128x384xbf16, #tpu.memory_space<vmem>>, vector<128x384xbf16>
    tpu.vector_store %arg4[%c0_5, %c0_6], %7 {strides = array<i32>} : memref<128x384xbf16, #tpu.memory_space<vmem>>, vector<128x384xbf16>,
    return
  }
  func.func @transform_0(%arg0: i32) -> (i32, i32) {
    %c0_i32 = arith.constant 0 : i32
    %c0_i32_0 = arith.constant 0 : i32
    return %arg0, %c0_i32 : i32, i32
  }
  func.func @transform_1(%arg0: i32) -> (i32, i32) {
    %c0_i32 = arith.constant 0 : i32
    %c0_i32_0 = arith.constant 0 : i32
    %c0_i32_1 = arith.constant 0 : i32
    return %c0_i32, %c0_i32_0 : i32, i32
  }
  func.func @transform_2(%arg0: i32) -> (i32, i32) {
    %c0_i32 = arith.constant 0 : i32
    %c0_i32_0 = arith.constant 0 : i32
    %c0_i32_1 = arith.constant 0 : i32
    return %c0_i32, %c0_i32_0 : i32, i32
  }
  func.func @transform_3(%arg0: i32) -> (i32, i32) {
    %c0_i32 = arith.constant 0 : i32
    %c0_i32_0 = arith.constant 0 : i32
    return %arg0, %c0_i32 : i32, i32
  }
}

</mosaic_0001>

<bundles_post_ra>
// kernel: tpu_custom_call.1
= control target key start
LH: loop header
LB: loop body
LE: loop exit
PB: predicated region body
PF: predicated region fallthrough
CT: control target
= control target key end

     0   :  { %8 = vsyncpa [#allocation3], 0  ;;  %s885_s0 = inlined_call_operand.hbm [shape: f32[128,128], index: 0, kind: input, shape index: {}]   ;;  %s886_s1 = inlined_call_operand.hbm [shape: bf16[128,384], index: 1, kind: input, shape index: {}]   ;;  %s887_s2 = inlined_call_operand.hbm [shape: f32[1,384], index: 2, kind: input, shape index: {}]   ;;  %s888_s3 = inlined_call_operand.hbm [shape: bf16[128,384], index: 3, kind: output, shape index: {}]  }
   0x1   :  { %9 = vsyncpa [#allocation6], 0  ;;  %s28_s14 = sshll.u32 %s886_s1, 4  ;;  %s29_s14 = int_to_ptr.hbm [resolvable:$true] %s28_s14 }
   0x2   :  { %10 = vsyncpa [#allocation4], 0  ;;  %s737_s15 = smov [#allocation5]   ;;  %s15_s19 = sshll.u32 %s885_s0, 4  ;;  %s16_s19 = int_to_ptr.hbm [resolvable:$true] %s15_s19 }
   0x3   :  { %s30_s16 = sshll.u32 %s737_s15, 4  ;;  %s738_s20 = smov 192   ;;  %s31_s16 = int_to_ptr.vmem [resolvable:$true] %s30_s16 }
   0x4   :  { %s739_s21 = smov 12   ;;  %s740_s22 = smov [#allocation2]  }
   0x5   :  { %36 = dma.hbm_to_vmem [thread:$0]  %s29_s14, 3072, %s31_s16, [#allocation6], %s738_s20, %s738_s20, %s739_s21  }
   0x6   :  { %s17_s23 = sshll.u32 %s740_s22, 4  ;;  %s741_s1 = smov 128   ;;  %s18_s23 = int_to_ptr.vmem [resolvable:$true] %s17_s23 }
   0x7   :  { %s742_s24 = smov 8   ;;  %s42_s27 = sshll.u32 %s887_s2, 4  ;;  %s43_s27 = int_to_ptr.hbm [resolvable:$true] %s42_s27 }
   0x8   :  { %23 = dma.hbm_to_vmem [thread:$0]  %s16_s19, 2048, %s18_s23, [#allocation3], %s741_s1, %s741_s1, %s742_s24  }
   0x9   :  { %s743_s28 = smov [#allocation7]  }
   0xa   :  { %s44_s0 = sshll.u32 %s743_s28, 4  ;;  %s45_s0 = int_to_ptr.vmem [resolvable:$true] %s44_s0 }
   0xb   :  { %47 = dma.hbm_to_vmem [thread:$0]  %s43_s27, 48, %s45_s0, [#allocation6]  }
   0xc   :  { %731 = dma.done.wait [#allocation3], 2048  }
   0xd   :  { %732 = vsyncadd [#allocation3], 4294965248 }
   0xe   :  { %733 = dma.done.wait [#allocation6], 3120  }
   0xf   :  { %734 = vsyncadd [#allocation6], 4294964176  ;;  %v569_v0 = vld [vmem:[#allocation5 + $0xa8] sm:$0xf]  ;;  %v601_v1 = vld [vmem:[#allocation5 + $0xb0] sm:$0xf0] }
  0x10   :  { %v600_v2 = vld [vmem:[#allocation5 + $0xac] sm:$0xf]  ;;  %v570_v3 = vor.u32 %v601_v1, %v569_v0  ;;  %v571_v4 = vld [vmem:[#allocation5 + $0xb4] sm:$0xf0]  ;;  %v577_v5 = vld [vmem:[#allocation5 + $0xb0] sm:$0xf] }
  0x11   :  { %v602_v6 = vld [vmem:[#allocation5 + $0xb8] sm:$0xf0]  ;;  %v777_v7 = vor.u32 %v600_v2, %v571_v4  ;;  %v557_v9 = vld [vmem:[#allocation5 + $0x90] sm:$0xf]  ;;  %v597_v11 = vld [vmem:[#allocation5 + $0x94] sm:$0xf] }
  0x12   :  { %v779_v8 = vor.u32 %v602_v6, %v577_v5  ;;  %v598_v10 = vld [vmem:[#allocation5 + $0x98] sm:$0xf0]  ;;  %252 = vmatpush.bf16.msra.mxu0 %v570_v3  ;;  %603 = vmatpush.bf16.msra.mxu3 %v570_v3  ;;  %v559_v13 = vld [vmem:[#allocation5 + $0x9c] sm:$0xf0]  ;;  %v565_v14 = vld [vmem:[#allocation5 + $0x98] sm:$0xf] }
  0x13   :  { %v558_v12 = vor.u32 %v598_v10, %v557_v9  ;;  %v599_v15 = vld [vmem:[#allocation5 + $0xa0] sm:$0xf0]  ;;  %301 = vmatpush.bf16.msra.mxu1 %v777_v7  ;;  %v783_v16 = vor.u32 %v597_v11, %v559_v13  ;;  %v545_v18 = vld [vmem:[#allocation5 + $0x78] sm:$0xf]  ;;  %v594_v20 = vld [vmem:[#allocation5 + $0x7c] sm:$0xf] }
  0x14   :  { %350 = vmatpush.bf16.msra.mxu2 %v779_v8  ;;  %v785_v17 = vor.u32 %v599_v15, %v565_v14  ;;  %v595_v19 = vld [vmem:[#allocation5 + $0x80] sm:$0xf0]  ;;  %v547_v21 = vld [vmem:[#allocation5 + $0x84] sm:$0xf0]  ;;  %v553_v22 = vld [vmem:[#allocation5 + $0x80] sm:$0xf] }
  0x15   :  { %v596_v23 = vld [vmem:[#allocation5 + $0x88] sm:$0xf0]  ;;  %v546_v24 = vor.u32 %v595_v19, %v545_v18  ;;  %v789_v25 = vor.u32 %v594_v20, %v547_v21  ;;  %v533_v27 = vld [vmem:[#allocation5 + $0x60] sm:$0xf]  ;;  %v591_v29 = vld [vmem:[#allocation5 + $0x64] sm:$0xf] }
  0x16   :  { %253 = vmatpush.bf16.msra.mxu0 %v558_v12  ;;  %604 = vmatpush.bf16.msra.mxu3 %v558_v12  ;;  %v791_v26 = vor.u32 %v596_v23, %v553_v22  ;;  %v592_v28 = vld [vmem:[#allocation5 + $0x68] sm:$0xf0]  ;;  %v535_v30 = vld [vmem:[#allocation5 + $0x6c] sm:$0xf0]  ;;  %v541_v31 = vld [vmem:[#allocation5 + $0x68] sm:$0xf] }
  0x17   :  { %302 = vmatpush.bf16.msra.mxu1 %v783_v16  ;;  %v593_v32 = vld [vmem:[#allocation5 + $0x70] sm:$0xf0]  ;;  %v534_v33 = vor.u32 %v592_v28, %v533_v27  ;;  %v795_v34 = vor.u32 %v591_v29, %v535_v30  ;;  %v521_v36 = vld [vmem:[#allocation5 + $0x48] sm:$0xf]  ;;  %v588_v38 = vld [vmem:[#allocation5 + $0x4c] sm:$0xf] }
  0x18   :  { %351 = vmatpush.bf16.msra.mxu2 %v785_v17  ;;  %v797_v35 = vor.u32 %v593_v32, %v541_v31  ;;  %v589_v37 = vld [vmem:[#allocation5 + $0x50] sm:$0xf0]  ;;  %v523_v39 = vld [vmem:[#allocation5 + $0x54] sm:$0xf0]  ;;  %v529_v40 = vld [vmem:[#allocation5 + $0x50] sm:$0xf] }
  0x19   :  { %v590_v41 = vld [vmem:[#allocation5 + $0x58] sm:$0xf0]  ;;  %v522_v42 = vor.u32 %v589_v37, %v521_v36  ;;  %v801_v43 = vor.u32 %v588_v38, %v523_v39  ;;  %v509_v45 = vld [vmem:[#allocation5 + $0x30] sm:$0xf]  ;;  %v585_v47 = vld [vmem:[#allocation5 + $0x34] sm:$0xf] }
  0x1a   :  { %254 = vmatpush.bf16.msra.mxu0 %v546_v24  ;;  %605 = vmatpush.bf16.msra.mxu3 %v546_v24  ;;  %v803_v44 = vor.u32 %v590_v41, %v529_v40  ;;  %v586_v46 = vld [vmem:[#allocation5 + $0x38] sm:$0xf0]  ;;  %v511_v48 = vld [vmem:[#allocation5 + $0x3c] sm:$0xf0]  ;;  %v517_v49 = vld [vmem:[#allocation5 + $0x38] sm:$0xf] }
  0x1b   :  { %303 = vmatpush.bf16.msra.mxu1 %v789_v25  ;;  %v587_v50 = vld [vmem:[#allocation5 + $0x40] sm:$0xf0]  ;;  %v510_v51 = vor.u32 %v586_v46, %v509_v45  ;;  %v514_v52 = vor.u32 %v585_v47, %v511_v48  ;;  %v497_v54 = vld [vmem:[#allocation5 + $0x18] sm:$0xf]  ;;  %v582_v56 = vld [vmem:[#allocation5 + $0x1c] sm:$0xf] }
  0x1c   :  { %352 = vmatpush.bf16.msra.mxu2 %v791_v26  ;;  %v807_v53 = vor.u32 %v587_v50, %v517_v49  ;;  %v583_v55 = vld [vmem:[#allocation5 + $0x20] sm:$0xf0]  ;;  %v499_v57 = vld [vmem:[#allocation5 + $0x24] sm:$0xf0]  ;;  %v505_v58 = vld [vmem:[#allocation5 + $0x20] sm:$0xf] }
  0x1d   :  { %v584_v59 = vld [vmem:[#allocation5 + $0x28] sm:$0xf0]  ;;  %v498_v60 = vor.u32 %v583_v55, %v497_v54  ;;  %v502_v61 = vor.u32 %v582_v56, %v499_v57  ;;  %v485_v63 = vld [vmem:[#allocation5] sm:$0xf]  ;;  %v579_v1 = vld [vmem:[#allocation5 + $0x4] sm:$0xf] }
  0x1e   :  { %255 = vmatpush.bf16.msra.mxu0 %v534_v33  ;;  %606 = vmatpush.bf16.msra.mxu3 %v534_v33  ;;  %v810_v62 = vor.u32 %v584_v59, %v505_v58  ;;  %v580_v0 = vld [vmem:[#allocation5 + $0x8] sm:$0xf0]  ;;  %v487_v2 = vld [vmem:[#allocation5 + $0xc] sm:$0xf0]  ;;  %v493_v3 = vld [vmem:[#allocation5 + $0x8] sm:$0xf] }
  0x1f   :  { %304 = vmatpush.bf16.msra.mxu1 %v795_v34  ;;  %v581_v4 = vld [vmem:[#allocation5 + $0x10] sm:$0xf0]  ;;  %v60_v5 = vld [vmem:[#allocation2] sm:$0xff]  ;;  %v486_v6 = vor.u32 %v580_v0, %v485_v63  ;;  %v61_v9 = vld [vmem:[#allocation2 + $0x8] sm:$0xff]  ;;  %v490_v12 = vor.u32 %v579_v1, %v487_v2  ;;  %s744_s2 = smov [#allocation8]   ;;  %s469_s5 = sshll.u32 %s888_s3, 4  ;;  %s470_s5 = int_to_ptr.hbm [resolvable:$true] %s469_s5 }
  0x20   :  { %353 = vmatpush.bf16.msra.mxu2 %v797_v35  ;;  %v72_v10 = vld [vmem:[#allocation2 + $0x60] sm:$0xff]  ;;  %v73_v11 = vld [vmem:[#allocation2 + $0x68] sm:$0xff]  ;;  %v494_v13 = vor.u32 %v581_v4, %v493_v3  ;;  %v76_v14 = vpack.c.bf16 %v61_v9, %v60_v5  ;;  %v62_v18 = vld [vmem:[#allocation2 + $0x10] sm:$0xff]  ;;  %s467_s29 = sshll.u32 %s744_s2, 4  ;;  %s468_s29 = int_to_ptr.vmem [resolvable:$true] %s467_s29 }
  0x21   :  { %v82_v15 = vpack.c.bf16 %v73_v11, %v72_v10  ;;  %v63_v19 = vld [vmem:[#allocation2 + $0x18] sm:$0xff]  ;;  %v74_v20 = vld [vmem:[#allocation2 + $0x70] sm:$0xff]  ;;  %v69_v29 = vld [vmem:[#allocation2 + $0x48] sm:$0xff] }
  0x22   :  { %256 = vmatpush.bf16.msra.mxu0 %v522_v42  ;;  %607 = vmatpush.bf16.msra.mxu3 %v522_v42  ;;  %v75_v21 = vld [vmem:[#allocation2 + $0x78] sm:$0xff]  ;;  %v77_v22 = vpack.c.bf16 %v63_v19, %v62_v18  ;;  %v116_v32 = vld [vmem:[#allocation7] sm:$0x7] }
  0x23   :  { %305 = vmatpush.bf16.msra.mxu1 %v801_v43  ;;  %v83_v23 = vpack.c.bf16 %v75_v21, %v74_v20  ;;  %v67_v27 = vld [vmem:[#allocation2 + $0x38] sm:$0xff]  ;;  %v825_v33 = vperm.slane %v116_v32, 0  ;;  %v831_v40 = vperm.slane %v116_v32, 2 }
  0x24   :  { %354 = vmatpush.bf16.msra.mxu2 %v803_v44  ;;  %v71_v30 = vld [vmem:[#allocation2 + $0x58] sm:$0xff] }
  0x26   :  { %257 = vmatpush.bf16.msra.mxu0 %v510_v51  ;;  %608 = vmatpush.bf16.msra.mxu3 %v510_v51 }
  0x27   :  { %306 = vmatpush.bf16.msra.mxu1 %v514_v52 }
  0x28   :  { %355 = vmatpush.bf16.msra.mxu2 %v807_v53 }
  0x2a   :  { %258 = vmatpush.bf16.msra.mxu0 %v498_v60  ;;  %609 = vmatpush.bf16.msra.mxu3 %v498_v60 }
  0x2b   :  { %307 = vmatpush.bf16.msra.mxu1 %v502_v61 }
  0x2c   :  { %356 = vmatpush.bf16.msra.mxu2 %v810_v62 }
  0x2e   :  { %259 = vmatpush.bf16.msra.mxu0 %v486_v6  ;;  %610 = vmatpush.bf16.msra.mxu3 %v486_v6 }
  0x2f   :  { %308 = vmatpush.bf16.msra.mxu1 %v490_v12 }
  0x30   :  { %357 = vmatpush.bf16.msra.mxu2 %v494_v13 }
  0x31   :  { %260 = vmatmul.bf16.vlgmr.msra.gmra.mxu0 %v76_v14  ;;  %290 = vmatmul.bf16.vlgmr.msra.gmra.mxu3 %v82_v15 }
  0x32   :  { %611 = vmatpush.bf16.msrb.mxu3 %v777_v7  ;;  %309 = vmatmul.bf16.vlgmr.msra.gmra.mxu1 %v76_v14  ;;  %v64_v7 = vld [vmem:[#allocation2 + $0x20] sm:$0xff] }
  0x33   :  { %358 = vmatmul.bf16.vlgmr.msra.gmra.mxu2 %v76_v14 }
  0x36   :  { %612 = vmatpush.bf16.msrb.mxu3 %v783_v16  ;;  %v65_v16 = vld [vmem:[#allocation2 + $0x28] sm:$0xff] }
  0x37   :  { %v78_v24 = vpack.c.bf16 %v65_v16, %v64_v7 }
  0x3a   :  { %613 = vmatpush.bf16.msrb.mxu3 %v789_v25  ;;  %v66_v25 = vld [vmem:[#allocation2 + $0x30] sm:$0xff] }
  0x3b   :  { %v79_v28 = vpack.c.bf16 %v67_v27, %v66_v25 }
  0x3e   :  { %614 = vmatpush.bf16.msrb.mxu3 %v795_v34  ;;  %v827_v34 = vperm.slane %v116_v32, 1 }
  0x41   :  { %265 = vmatmul.bf16.gmra.mxu0 %v77_v22  ;;  %295 = vmatmul.bf16.gmra.mxu3 %v83_v23 }
  0x42   :  { %615 = vmatpush.bf16.msrb.mxu3 %v801_v43  ;;  %314 = vmatmul.bf16.gmra.mxu1 %v77_v22 }
  0x43   :  { %363 = vmatmul.bf16.gmra.mxu2 %v77_v22 }
  0x46   :  { %616 = vmatpush.bf16.msrb.mxu3 %v514_v52 }
  0x4a   :  { %617 = vmatpush.bf16.msrb.mxu3 %v502_v61 }
  0x4e   :  { %618 = vmatpush.bf16.msrb.mxu3 %v490_v12 }
  0x51   :  { %270 = vmatmul.bf16.gmra.mxu0 %v78_v24  ;;  %339 = vmatmul.bf16.vlgmr.msrb.gmra.mxu3 %v82_v15 }
  0x52   :  { %619 = vmatpush.bf16.msra.mxu3 %v779_v8  ;;  %319 = vmatmul.bf16.gmra.mxu1 %v78_v24  ;;  %v68_v8 = vld [vmem:[#allocation2 + $0x40] sm:$0xff] }
  0x53   :  { %368 = vmatmul.bf16.gmra.mxu2 %v78_v24 }
  0x56   :  { %620 = vmatpush.bf16.msra.mxu3 %v785_v17  ;;  %v80_v17 = vpack.c.bf16 %v69_v29, %v68_v8 }
  0x5a   :  { %621 = vmatpush.bf16.msra.mxu3 %v791_v26  ;;  %v70_v26 = vld [vmem:[#allocation2 + $0x50] sm:$0xff] }
  0x5b   :  { %v81_v31 = vpack.c.bf16 %v71_v30, %v70_v26 }
  0x5e   :  { %622 = vmatpush.bf16.msra.mxu3 %v797_v35 }
  0x61   :  { %275 = vmatmul.bf16.gmra.mxu0 %v79_v28  ;;  %344 = vmatmul.bf16.gmra.mxu3 %v83_v23 }
  0x62   :  { %623 = vmatpush.bf16.msra.mxu3 %v803_v44  ;;  %324 = vmatmul.bf16.gmra.mxu1 %v79_v28 }
  0x63   :  { %373 = vmatmul.bf16.gmra.mxu2 %v79_v28 }
  0x66   :  { %624 = vmatpush.bf16.msra.mxu3 %v807_v53 }
  0x6a   :  { %625 = vmatpush.bf16.msra.mxu3 %v810_v62 }
  0x6e   :  { %626 = vmatpush.bf16.msra.mxu3 %v494_v13 }
  0x71   :  { %280 = vmatmul.bf16.gmra.mxu0 %v80_v17  ;;  %388 = vmatmul.bf16.vlgmr.msra.gmra.mxu3 %v82_v15 }
  0x72   :  { %329 = vmatmul.bf16.gmra.mxu1 %v80_v17 }
  0x73   :  { %378 = vmatmul.bf16.gmra.mxu2 %v80_v17 }
  0x81   :  { %285 = vmatmul.bf16.gmra.mxu0 %v81_v31  ;;  %393 = vmatmul.bf16.gmra.mxu3 %v83_v23 }
  0x82   :  { %334 = vmatmul.bf16.gmra.mxu1 %v81_v31 }
  0x83   :  { %383 = vmatmul.bf16.gmra.mxu2 %v81_v31 }
  0xae   :  { %v261_v35 = vpop.f32.mrf.mxu0 }
  0xaf   :  { %v262_v36 = vadd.f32 %v261_v35, %v825_v33  ;;  %v310_v37 = vpop.f32.mrf.mxu1 }
  0xb0   :  { %v311_v38 = vadd.f32 %v310_v37, %v827_v34 }
  0xb2   :  { %v399_v39 = vpack.c.bf16 %v311_v38, %v262_v36 }
  0xb4   :  { %431 = vst [vmem:[#allocation8] sm:$0xff] %v399_v39  ;;  %v291_v41 = vpop.f32.mrf.mxu3 }
  0xb5   :  { %v292_v18 = vadd.f32 %v291_v41, %v825_v33 }
  0xb6   :  { %v359_v42 = vpop.f32.mrf.mxu2  ;;  %v263_v44 = vpop.f32.mrf.mxu0 }
  0xb7   :  { %v360_v43 = vadd.f32 %v359_v42, %v831_v40  ;;  %v264_v45 = vadd.f32 %v263_v44, %v825_v33  ;;  %v312_v46 = vpop.f32.mrf.mxu1 }
  0xb8   :  { %v313_v48 = vadd.f32 %v312_v46, %v827_v34 }
  0xb9   :  { %v400_v47 = vpack.c.bf16 %v360_v43, %v360_v43 }
  0xba   :  { %v401_v49 = vpack.c.bf16 %v313_v48, %v264_v45 }
  0xbb   :  { %432 = vst [vmem:[#allocation8 + $0x8] sm:$0xf] %v400_v47 }
  0xbc   :  { %433 = vst [vmem:[#allocation8 + $0xc] sm:$0xff] %v401_v49  ;;  %v293_v50 = vpop.f32.mrf.mxu3 }
  0xbd   :  { %v294_v8 = vadd.f32 %v293_v50, %v825_v33 }
  0xbe   :  { %v361_v51 = vpop.f32.mrf.mxu2  ;;  %v266_v53 = vpop.f32.mrf.mxu0 }
  0xbf   :  { %v362_v52 = vadd.f32 %v361_v51, %v831_v40  ;;  %v267_v54 = vadd.f32 %v266_v53, %v825_v33  ;;  %v315_v55 = vpop.f32.mrf.mxu1 }
  0xc0   :  { %v316_v57 = vadd.f32 %v315_v55, %v827_v34 }
  0xc1   :  { %v402_v56 = vpack.c.bf16 %v362_v52, %v362_v52 }
  0xc2   :  { %v403_v58 = vpack.c.bf16 %v316_v57, %v267_v54 }
  0xc3   :  { %434 = vst [vmem:[#allocation8 + $0x14] sm:$0xf] %v402_v56 }
  0xc4   :  { %435 = vst [vmem:[#allocation8 + $0x18] sm:$0xff] %v403_v58  ;;  %v296_v59 = vpop.f32.mrf.mxu3 }
  0xc5   :  { %v297_v41 = vadd.f32 %v296_v59, %v825_v33 }
  0xc6   :  { %v364_v60 = vpop.f32.mrf.mxu2  ;;  %v268_v62 = vpop.f32.mrf.mxu0 }
  0xc7   :  { %v365_v61 = vadd.f32 %v364_v60, %v831_v40  ;;  %v269_v63 = vadd.f32 %v268_v62, %v825_v33  ;;  %v317_v0 = vpop.f32.mrf.mxu1 }
  0xc8   :  { %v318_v2 = vadd.f32 %v317_v0, %v827_v34 }
  0xc9   :  { %v404_v1 = vpack.c.bf16 %v365_v61, %v365_v61 }
  0xca   :  { %v405_v3 = vpack.c.bf16 %v318_v2, %v269_v63 }
  0xcb   :  { %436 = vst [vmem:[#allocation8 + $0x20] sm:$0xf] %v404_v1 }
  0xcc   :  { %437 = vst [vmem:[#allocation8 + $0x24] sm:$0xff] %v405_v3  ;;  %v298_v4 = vpop.f32.mrf.mxu3 }
  0xcd   :  { %v299_v53 = vadd.f32 %v298_v4, %v825_v33 }
  0xce   :  { %v366_v5 = vpop.f32.mrf.mxu2  ;;  %v271_v9 = vpop.f32.mrf.mxu0 }
  0xcf   :  { %v367_v6 = vadd.f32 %v366_v5, %v831_v40  ;;  %v272_v10 = vadd.f32 %v271_v9, %v825_v33  ;;  %v320_v11 = vpop.f32.mrf.mxu1 }
  0xd0   :  { %v321_v13 = vadd.f32 %v320_v11, %v827_v34 }
  0xd1   :  { %v406_v12 = vpack.c.bf16 %v367_v6, %v367_v6 }
  0xd2   :  { %v407_v14 = vpack.c.bf16 %v321_v13, %v272_v10 }
  0xd3   :  { %438 = vst [vmem:[#allocation8 + $0x2c] sm:$0xf] %v406_v12 }
  0xd4   :  { %439 = vst [vmem:[#allocation8 + $0x30] sm:$0xff] %v407_v14  ;;  %v340_v15 = vpop.f32.mrf.mxu3 }
  0xd5   :  { %v341_v19 = vadd.f32 %v340_v15, %v827_v34 }
  0xd6   :  { %v369_v20 = vpop.f32.mrf.mxu2  ;;  %v273_v22 = vpop.f32.mrf.mxu0 }
  0xd7   :  { %v370_v21 = vadd.f32 %v369_v20, %v831_v40  ;;  %v423_v23 = vpack.c.bf16 %v341_v19, %v292_v18  ;;  %v274_v7 = vadd.f32 %v273_v22, %v825_v33  ;;  %v322_v16 = vpop.f32.mrf.mxu1 }
  0xd8   :  { %v323_v25 = vadd.f32 %v322_v16, %v827_v34 }
  0xd9   :  { %v408_v24 = vpack.c.bf16 %v370_v21, %v370_v21  ;;  %455 = vst [vmem:[#allocation8 + $0x90] sm:$0xff] %v423_v23 }
  0xda   :  { %v409_v27 = vpack.c.bf16 %v323_v25, %v274_v7 }
  0xdb   :  { %440 = vst [vmem:[#allocation8 + $0x38] sm:$0xf] %v408_v24 }
  0xdc   :  { %441 = vst [vmem:[#allocation8 + $0x3c] sm:$0xff] %v409_v27  ;;  %v342_v28 = vpop.f32.mrf.mxu3 }
  0xdd   :  { %v343_v29 = vadd.f32 %v342_v28, %v827_v34 }
  0xde   :  { %v371_v17 = vpop.f32.mrf.mxu2  ;;  %v276_v30 = vpop.f32.mrf.mxu0 }
  0xdf   :  { %v372_v26 = vadd.f32 %v371_v17, %v831_v40  ;;  %v425_v31 = vpack.c.bf16 %v343_v29, %v294_v8  ;;  %v277_v32 = vadd.f32 %v276_v30, %v825_v33  ;;  %v325_v35 = vpop.f32.mrf.mxu1 }
  0xe0   :  { %v326_v37 = vadd.f32 %v325_v35, %v827_v34 }
  0xe1   :  { %v410_v36 = vpack.c.bf16 %v372_v26, %v372_v26  ;;  %457 = vst [vmem:[#allocation8 + $0x9c] sm:$0xff] %v425_v31 }
  0xe2   :  { %v411_v38 = vpack.c.bf16 %v326_v37, %v277_v32 }
  0xe3   :  { %442 = vst [vmem:[#allocation8 + $0x44] sm:$0xf] %v410_v36 }
  0xe4   :  { %443 = vst [vmem:[#allocation8 + $0x48] sm:$0xff] %v411_v38  ;;  %v345_v39 = vpop.f32.mrf.mxu3 }
  0xe5   :  { %v346_v42 = vadd.f32 %v345_v39, %v827_v34 }
  0xe6   :  { %v374_v43 = vpop.f32.mrf.mxu2  ;;  %v278_v45 = vpop.f32.mrf.mxu0 }
  0xe7   :  { %v375_v44 = vadd.f32 %v374_v43, %v831_v40  ;;  %v427_v46 = vpack.c.bf16 %v346_v42, %v297_v41  ;;  %v279_v47 = vadd.f32 %v278_v45, %v825_v33  ;;  %v327_v48 = vpop.f32.mrf.mxu1 }
  0xe8   :  { %v328_v50 = vadd.f32 %v327_v48, %v827_v34 }
  0xe9   :  { %v412_v49 = vpack.c.bf16 %v375_v44, %v375_v44  ;;  %459 = vst [vmem:[#allocation8 + $0xa8] sm:$0xff] %v427_v46 }
  0xea   :  { %v413_v51 = vpack.c.bf16 %v328_v50, %v279_v47 }
  0xeb   :  { %444 = vst [vmem:[#allocation8 + $0x50] sm:$0xf] %v412_v49 }
  0xec   :  { %445 = vst [vmem:[#allocation8 + $0x54] sm:$0xff] %v413_v51  ;;  %v347_v52 = vpop.f32.mrf.mxu3 }
  0xed   :  { %v348_v54 = vadd.f32 %v347_v52, %v827_v34 }
  0xee   :  { %v376_v55 = vpop.f32.mrf.mxu2  ;;  %v281_v57 = vpop.f32.mrf.mxu0 }
  0xef   :  { %v377_v56 = vadd.f32 %v376_v55, %v831_v40  ;;  %v429_v58 = vpack.c.bf16 %v348_v54, %v299_v53  ;;  %v282_v59 = vadd.f32 %v281_v57, %v825_v33  ;;  %v330_v60 = vpop.f32.mrf.mxu1 }
  0xf0   :  { %v331_v62 = vadd.f32 %v330_v60, %v827_v34 }
  0xf1   :  { %v414_v61 = vpack.c.bf16 %v377_v56, %v377_v56  ;;  %461 = vst [vmem:[#allocation8 + $0xb4] sm:$0xff] %v429_v58 }
  0xf2   :  { %v415_v63 = vpack.c.bf16 %v331_v62, %v282_v59 }
  0xf3   :  { %446 = vst [vmem:[#allocation8 + $0x5c] sm:$0xf] %v414_v61 }
  0xf4   :  { %447 = vst [vmem:[#allocation8 + $0x60] sm:$0xff] %v415_v63  ;;  %v389_v0 = vpop.f32.mrf.mxu3 }
  0xf5   :  { %v390_v2 = vadd.f32 %v389_v0, %v831_v40 }
  0xf6   :  { %v379_v1 = vpop.f32.mrf.mxu2  ;;  %v283_v4 = vpop.f32.mrf.mxu0 }
  0xf7   :  { %v380_v3 = vadd.f32 %v379_v1, %v831_v40  ;;  %v424_v5 = vpack.c.bf16 %v390_v2, %v390_v2  ;;  %v284_v6 = vadd.f32 %v283_v4, %v825_v33  ;;  %v332_v9 = vpop.f32.mrf.mxu1 }
  0xf8   :  { %v333_v11 = vadd.f32 %v332_v9, %v827_v34 }
  0xf9   :  { %v416_v10 = vpack.c.bf16 %v380_v3, %v380_v3  ;;  %456 = vst [vmem:[#allocation8 + $0x98] sm:$0xf] %v424_v5 }
  0xfa   :  { %v417_v12 = vpack.c.bf16 %v333_v11, %v284_v6 }
  0xfb   :  { %448 = vst [vmem:[#allocation8 + $0x68] sm:$0xf] %v416_v10 }
  0xfc   :  { %449 = vst [vmem:[#allocation8 + $0x6c] sm:$0xff] %v417_v12  ;;  %v391_v13 = vpop.f32.mrf.mxu3 }
  0xfd   :  { %v392_v15 = vadd.f32 %v391_v13, %v831_v40 }
  0xfe   :  { %v381_v14 = vpop.f32.mrf.mxu2  ;;  %v286_v19 = vpop.f32.mrf.mxu0 }
  0xff   :  { %v382_v18 = vadd.f32 %v381_v14, %v831_v40  ;;  %v426_v20 = vpack.c.bf16 %v392_v15, %v392_v15  ;;  %v287_v21 = vadd.f32 %v286_v19, %v825_v33  ;;  %v335_v22 = vpop.f32.mrf.mxu1 }
 0x100   :  { %v336_v7 = vadd.f32 %v335_v22, %v827_v34 }
 0x101   :  { %v418_v23 = vpack.c.bf16 %v382_v18, %v382_v18  ;;  %458 = vst [vmem:[#allocation8 + $0xa4] sm:$0xf] %v426_v20 }
 0x102   :  { %v419_v16 = vpack.c.bf16 %v336_v7, %v287_v21 }
 0x103   :  { %450 = vst [vmem:[#allocation8 + $0x74] sm:$0xf] %v418_v23 }
 0x104   :  { %451 = vst [vmem:[#allocation8 + $0x78] sm:$0xff] %v419_v16  ;;  %v394_v24 = vpop.f32.mrf.mxu3 }
 0x105   :  { %v395_v27 = vadd.f32 %v394_v24, %v831_v40 }
 0x106   :  { %v384_v25 = vpop.f32.mrf.mxu2  ;;  %v288_v8 = vpop.f32.mrf.mxu0 }
 0x107   :  { %v385_v28 = vadd.f32 %v384_v25, %v831_v40  ;;  %v428_v29 = vpack.c.bf16 %v395_v27, %v395_v27  ;;  %v289_v17 = vadd.f32 %v288_v8, %v825_v33  ;;  %v337_v26 = vpop.f32.mrf.mxu1 }
 0x108   :  { %v338_v31 = vadd.f32 %v337_v26, %v827_v34 }
 0x109   :  { %v420_v30 = vpack.c.bf16 %v385_v28, %v385_v28  ;;  %460 = vst [vmem:[#allocation8 + $0xb0] sm:$0xf] %v428_v29 }
 0x10a   :  { %v421_v32 = vpack.c.bf16 %v338_v31, %v289_v17 }
 0x10b   :  { %452 = vst [vmem:[#allocation8 + $0x80] sm:$0xf] %v420_v30 }
 0x10c   :  { %453 = vst [vmem:[#allocation8 + $0x84] sm:$0xff] %v421_v32  ;;  %v396_v35 = vpop.f32.mrf.mxu3 }
 0x10d   :  { %v397_v37 = vadd.f32 %v396_v35, %v831_v40 }
 0x10e   :  { %v386_v36 = vpop.f32.mrf.mxu2 }
 0x10f   :  { %v387_v33 = vadd.f32 %v386_v36, %v831_v40  ;;  %v430_v38 = vpack.c.bf16 %v397_v37, %v397_v37 }
 0x111   :  { %v422_v39 = vpack.c.bf16 %v387_v33, %v387_v33  ;;  %462 = vst [vmem:[#allocation8 + $0xbc] sm:$0xf] %v430_v38 }
 0x113   :  { %454 = vst [vmem:[#allocation8 + $0x8c] sm:$0xf] %v422_v39 }
 0x114   :  { %475 = dma.vmem_to_hbm [thread:$0]  %s468_s29, 3072, %s470_s5, [#allocation4], %s738_s20, %s738_s20, %s739_s21  }
 0x115   :  { %735 = dma.done.wait [#allocation4], 3072  }
 0x116   :  { %736 = vsyncadd [#allocation4], 4294964224 }
 0x117   :  { %480 = vsyncpa [#allocation3], 1 }
 0x118   :  { %481 = vsyncpa [#allocation6], 1 }
 0x119   :  { %482 = vsyncpa [#allocation4], 1 }

</bundles_post_ra>
